<compile_context>
chip_gen: v6e
topology: v6e:2x2x1
jax: 0.10.0
libtpu: 0.0.40
codegen_flags: <defaults>
</compile_context>

<pallas_src>
import functools
import math

import jax
import jax.numpy as jnp
from jax import lax
from jax.experimental import pallas as pl
from jax.experimental.pallas import tpu as pltpu

_NORM_EPS = 1e-24   # NaN-safety for all-zero rows; no effect on normal embeddings.


def _speaker_slice(x_ref, j, tn, M):
    """Rows j, j+M, j+2M, ... (utterance j of each of the tn speakers in this block)."""
    if M == 1:
        return x_ref[pl.ds(0, tn), :]
    return x_ref[pl.ds(j, tn, stride=M), :]


def _normalized_last_and_centroid(x_ref, M):
    """From a (tn*M, D) block (tn speakers x M consecutive utterance rows), return
    L2-normalized f32 (tn, D) last-utterance rows and centroid rows.

    Pure strided loads + VPU adds (no MXU, no iota masks); only (tn, D) slices are
    upcast to f32, never the whole slab."""
    tn = x_ref.shape[0] // M
    last = _speaker_slice(x_ref, M - 1, tn, M).astype(jnp.float32)
    cent = last
    for j in range(M - 1):
        cent = cent + _speaker_slice(x_ref, j, tn, M).astype(jnp.float32)
    cent = cent * (1.0 / M)

    last_hat = last * lax.rsqrt(
        jnp.maximum(jnp.sum(last * last, axis=-1, keepdims=True), _NORM_EPS))
    cent_hat = cent * lax.rsqrt(
        jnp.maximum(jnp.sum(cent * cent, axis=-1, keepdims=True), _NORM_EPS))
    return last_hat, cent_hat


def _cross_entropy(last_hat, cent_hat, w, b):
    """CE(logits = clamp(cos,1e-6)*w + b, labels=arange(N)), mean reduction -> (1,1)."""
    n = last_hat.shape[0]
    # Cosine matrix from one MXU matmul of the pre-normalized rows.
    cos = lax.dot_general(last_hat, cent_hat, (((1,), (1,)), ((), ())),
                          preferred_element_type=jnp.float32)            # (N, N)
    logits = jnp.maximum(cos, 1e-6) * w + b
    # Target (diagonal) logits via a row-wise dot -- no NxN iota masks.
    diag_logit = jnp.maximum(
        jnp.sum(last_hat * cent_hat, axis=-1, keepdims=True), 1e-6) * w + b   # (N, 1)
    row_max = jnp.max(logits, axis=-1, keepdims=True)
    lse = row_max + jnp.log(
        jnp.sum(jnp.exp(logits - row_max), axis=-1, keepdims=True))       # (N, 1)
    return jnp.sum(lse - diag_logit, axis=0, keepdims=True) * (1.0 / n)   # (1, 1)


# ---------------------------------------------------------------------------
# Fused path (common case): reduction tiles + pl.when epilogue in one kernel.
# ---------------------------------------------------------------------------
def _fused_kernel(x_ref, loss_ref, last_sc, cent_sc, *, M, N, w, b):
    n_pad, _ = last_sc.shape
    tn = x_ref.shape[0] // M

    last_hat, cent_hat = _normalized_last_and_centroid(x_ref, M)

    if tn == n_pad:                       # single grid step: whole scratch
        last_sc[...] = last_hat
        cent_sc[...] = cent_hat
    else:                                 # tn is a multiple of 8 -> aligned stores
        r0 = pl.multiple_of(pl.program_id(0) * tn, 8)
        last_sc[pl.ds(r0, tn), :] = last_hat
        cent_sc[pl.ds(r0, tn), :] = cent_hat

    @pl.when(pl.program_id(0) == pl.num_programs(0) - 1)
    def _():
        lh = last_sc[...]
        ch = cent_sc[...]
        if n_pad != N:                    # drop padded speakers (static slice)
            lh = lh[:N]
            ch = ch[:N]
        loss_ref[...] = _cross_entropy(lh, ch, w, b)


# ---------------------------------------------------------------------------
# Two-stage path (large slabs): "parallel" reduction + tiny epilogue kernel.
# ---------------------------------------------------------------------------
def _reduce_kernel(x_ref, out_ref, *, M):
    last_hat, cent_hat = _normalized_last_and_centroid(x_ref, M)
    out_ref[0] = last_hat                 # packed (2, tn, D): one output, half the DMAs
    out_ref[1] = cent_hat


def _loss_kernel(packed_ref, loss_ref, *, N, w, b):
    lh = packed_ref[0]
    ch = packed_ref[1]
    if lh.shape[0] != N:                  # drop padded speakers
        lh = lh[:N]
        ch = ch[:N]
    loss_ref[...] = _cross_entropy(lh, ch, w, b)


# ---------------------------------------------------------------------------
# Tiling plan & wrapper.
# ---------------------------------------------------------------------------
def _plan_speaker_tile(N, M, D, itemsize, block_budget_bytes):
    """Pick the speaker-tile size tn and the padded speaker count n_pad.

    * Full-slab block if it fits the budget (no alignment constraint needed).
    * Otherwise the largest tn that (a) fits the budget, (b) is a multiple of 8
      (sublane-aligned scratch stores), and (c) keeps tn*M a multiple of the
      sublane-pack requirement (8 f32 / 16 bf16 / 32 int8).  N is padded up to a
      multiple of tn; padded speakers are masked out in the epilogue.
    """
    row_bytes = M * D * itemsize
    if N * row_bytes <= block_budget_bytes:
        return N, N
    sub = max(8, 32 // itemsize)
    g = sub // math.gcd(M, sub)
    align = (8 * g) // math.gcd(8, g)          # lcm(8, g)
    tn = (block_budget_bytes // row_bytes) // align * align
    tn = max(align, tn)
    n_pad = ((N + tn - 1) // tn) * tn
    return tn, n_pad


def ang_proto_loss_stable(dvecs, w=10.0, b=-5.0, *,
                          block_budget_bytes=6 << 20,
                          fuse_threshold_bytes=16 << 20):
    """dvecs: (N, M, D) = (speakers, utterances/speaker, embedding dim). Scalar f32 loss.

    block_budget_bytes: per-block VMEM budget for the input tile (x2 for double
    buffering stays under the smallest scoped-VMEM defaults on v5e/v6e/v7x).
    fuse_threshold_bytes: slabs at or below this run the single fused kernel; larger
    slabs use the two-stage path so the reduction grid stays megacore-"parallel".
    """
    N, M, D = dvecs.shape
    itemsize = dvecs.dtype.itemsize
    # Sublane-dense layout: (N*M, D) slab (free reshape of a contiguous array);
    # input dtype (e.g. bf16) is preserved through the HBM->VMEM DMA.
    slab = dvecs.reshape(N * M, D)

    tn, n_pad = _plan_speaker_tile(N, M, D, itemsize, block_budget_bytes)
    if n_pad != N:
        slab = jnp.pad(slab, ((0, (n_pad - N) * M), (0, 0)))
    grid = (n_pad // tn,)

    w = float(w)
    b = float(b)

    if N * M * D * itemsize <= fuse_threshold_bytes:
        # Fused: reduction tiles feed persistent VMEM scratch; epilogue on last step.
        loss = pl.pallas_call(
            functools.partial(_fused_kernel, M=M, N=N, w=w, b=b),
            grid=grid,
            in_specs=[pl.BlockSpec((tn * M, D), lambda i: (i, 0))],
            out_specs=pl.BlockSpec((1, 1), lambda i: (0, 0)),
            out_shape=jax.ShapeDtypeStruct((1, 1), jnp.float32),
            scratch_shapes=[pltpu.VMEM((n_pad, D), jnp.float32),
                            pltpu.VMEM((n_pad, D), jnp.float32)],
            compiler_params=pltpu.CompilerParams(
                dimension_semantics=("arbitrary",)),
        )(slab)
        return loss[0, 0]

    # Two-stage: "parallel" tiled reduction (uses both v7x TensorCores), packed
    # (2, N, D) f32 intermediate, then a tiny epilogue kernel.
    packed = pl.pallas_call(
        functools.partial(_reduce_kernel, M=M),
        grid=grid,
        in_specs=[pl.BlockSpec((tn * M, D), lambda i: (i, 0))],
        out_specs=pl.BlockSpec((2, tn, D), lambda i: (0, i, 0)),
        out_shape=jax.ShapeDtypeStruct((2, n_pad, D), jnp.float32),
        compiler_params=pltpu.CompilerParams(
            dimension_semantics=("parallel",)),
    )(slab)

    loss = pl.pallas_call(
        functools.partial(_loss_kernel, N=N, w=w, b=b),
        in_specs=[pl.BlockSpec(memory_space=pltpu.MemorySpace.VMEM)],
        out_specs=pl.BlockSpec(memory_space=pltpu.MemorySpace.VMEM),
        out_shape=jax.ShapeDtypeStruct((1, 1), jnp.float32),
    )(packed)
    return loss[0, 0]


def _reference_loss(dvecs, w=10.0, b=-5.0):
    # Pure-JAX mirror of the PyTorch forward (correctness check only).
    N, M, D = dvecs.shape
    x = dvecs.astype(jnp.float32)
    centroids = jnp.mean(x, axis=1)
    last = x[:, M - 1, :]
    dots = last @ centroids.T
    denom = (jnp.linalg.norm(last, axis=1, keepdims=True)
             * jnp.linalg.norm(centroids, axis=1)[None, :])
    cos = jnp.maximum(dots / denom, 1e-6)
    logits = cos * w + b
    lse = jax.scipy.special.logsumexp(logits, axis=1)
    return jnp.mean(lse - jnp.diag(logits))


if __name__ == "__main__":
    init_w, init_b = 10.0, -5.0   # module __init__ defaults

    # 1) Small common case: fused kernel, single grid step.
    dvecs = jax.random.normal(jax.random.PRNGKey(0), (4, 3, 32), dtype=jnp.float32)
    loss = jax.block_until_ready(ang_proto_loss_stable(dvecs, init_w, init_b))
    ref = _reference_loss(dvecs, init_w, init_b)
    assert jnp.allclose(loss, ref, atol=1e-5, rtol=1e-5), (loss, ref)

    # 2) Two-stage path with ragged N (tn=8, N padded 20->24, [:N] mask), forced
    #    by a tiny block budget and fuse_threshold=0.
    dvecs2 = jax.random.normal(jax.random.PRNGKey(0), (20, 3, 64), dtype=jnp.float32)
    loss2 = jax.block_until_ready(
        ang_proto_loss_stable(dvecs2, init_w, init_b,
                              block_budget_bytes=8 * 3 * 64 * 4,
                              fuse_threshold_bytes=0))
    ref2 = _reference_loss(dvecs2, init_w, init_b)
    assert jnp.allclose(loss2, ref2, atol=1e-5, rtol=1e-5), (loss2, ref2)

    # 3) Fused multi-step grid with bf16 input (tn=16 for sublane packing, N padded
    #    20->32), forced by a tiny block budget.
    dvecs3 = jax.random.normal(jax.random.PRNGKey(1), (20, 3, 64)).astype(jnp.bfloat16)
    loss3 = jax.block_until_ready(
        ang_proto_loss_stable(dvecs3, init_w, init_b,
                              block_budget_bytes=16 * 3 * 64 * 2))
    ref3 = _reference_loss(dvecs3, init_w, init_b)
    assert jnp.allclose(loss3, ref3, atol=2e-4, rtol=2e-4), (loss3, ref3)

    print("KERNEL_OK")
</pallas_src>

<mosaic_0001>
module attributes {stable_mosaic.version = 11 : i64} {
  func.func @_fused_kernel(%arg0: i32, %arg1: memref<12x32xf32, #tpu.memory_space<vmem>>, %arg2: memref<1x1xf32, #tpu.memory_space<vmem>>, %arg3: memref<4x32xf32, #tpu.memory_space<vmem>>, %arg4: memref<4x32xf32, #tpu.memory_space<vmem>>) attributes {dimension_semantics = [#tpu.dimension_semantics<arbitrary>], iteration_bounds = array<i64: 1>, scalar_prefetch = 0 : i64, scratch_operands = 2 : i64, tpu.core_type = #tpu.core_type<tc>, window_params = [{transform_indices = @transform_0, window_bounds = array<i64: 12, 32>}, {pipeline_mode = #tpu.pipeline_mode<synchronous>, transform_indices = @transform_1, window_bounds = array<i64: 1, 1>}]} {
    %c2 = arith.constant 2 : index
    %c0 = arith.constant 0 : index
    %0 = tpu.strided_load %arg1[%c2, %c0] {strides = array<i32: 3, 1>} : memref<12x32xf32, #tpu.memory_space<vmem>>, vector<4x32xf32>
    %c0_0 = arith.constant 0 : index
    %c0_1 = arith.constant 0 : index
    %1 = tpu.strided_load %arg1[%c0_0, %c0_1] {strides = array<i32: 3, 1>} : memref<12x32xf32, #tpu.memory_space<vmem>>, vector<4x32xf32>
    %2 = arith.addf %0, %1 : vector<4x32xf32>
    %c1 = arith.constant 1 : index
    %c0_2 = arith.constant 0 : index
    %3 = tpu.strided_load %arg1[%c1, %c0_2] {strides = array<i32: 3, 1>} : memref<12x32xf32, #tpu.memory_space<vmem>>, vector<4x32xf32>
    %4 = arith.addf %2, %3 : vector<4x32xf32>
    %cst = arith.constant 0.333333343 : f32
    %5 = vector.broadcast %cst : f32 to vector<4x32xf32>
    %6 = arith.mulf %4, %5 : vector<4x32xf32>
    %7 = arith.mulf %0, %0 : vector<4x32xf32>
    %cst_3 = arith.constant dense<0.000000e+00> : vector<4xf32>
    %8 = vector.multi_reduction <add>, %7, %cst_3 [1] : vector<4x32xf32> to vector<4xf32>
    %9 = vector.shape_cast %8 : vector<4xf32> to vector<4x1xf32>
    %cst_4 = arith.constant 1.000000e-24 : f32
    %10 = vector.broadcast %cst_4 : f32 to vector<4x1xf32>
    %11 = arith.maximumf %9, %10 : vector<4x1xf32>
    %12 = math.rsqrt %11 : vector<4x1xf32>
    %13 = vector.broadcast %12 : vector<4x1xf32> to vector<4x32xf32>
    %14 = arith.mulf %0, %13 : vector<4x32xf32>
    %15 = arith.mulf %6, %6 : vector<4x32xf32>
    %cst_5 = arith.constant dense<0.000000e+00> : vector<4xf32>
    %16 = vector.multi_reduction <add>, %15, %cst_5 [1] : vector<4x32xf32> to vector<4xf32>
    %17 = vector.shape_cast %16 : vector<4xf32> to vector<4x1xf32>
    %cst_6 = arith.constant 1.000000e-24 : f32
    %18 = vector.broadcast %cst_6 : f32 to vector<4x1xf32>
    %19 = arith.maximumf %17, %18 : vector<4x1xf32>
    %20 = math.rsqrt %19 : vector<4x1xf32>
    %21 = vector.broadcast %20 : vector<4x1xf32> to vector<4x32xf32>
    %22 = arith.mulf %6, %21 : vector<4x32xf32>
    %c0_7 = arith.constant 0 : index
    %c0_8 = arith.constant 0 : index
    %23 = vector.load %arg3[%c0_7, %c0_8] : memref<4x32xf32, #tpu.memory_space<vmem>>, vector<4x32xf32>
    tpu.vector_store %arg3[%c0_7, %c0_8], %14 {strides = array<i32>} : memref<4x32xf32, #tpu.memory_space<vmem>>, vector<4x32xf32>,
    %c0_9 = arith.constant 0 : index
    %c0_10 = arith.constant 0 : index
    %24 = vector.load %arg4[%c0_9, %c0_10] : memref<4x32xf32, #tpu.memory_space<vmem>>, vector<4x32xf32>
    tpu.vector_store %arg4[%c0_9, %c0_10], %22 {strides = array<i32>} : memref<4x32xf32, #tpu.memory_space<vmem>>, vector<4x32xf32>,
    %c0_i32 = arith.constant 0 : i32
    %25 = arith.cmpi eq, %arg0, %c0_i32 : i32
    %26 = arith.extui %25 : i1 to i32
    %c0_i32_11 = arith.constant 0 : i32
    %27 = arith.cmpi ne, %26, %c0_i32_11 : i32
    scf.if %27 {
      %c0_12 = arith.constant 0 : index
      %c0_13 = arith.constant 0 : index
      %28 = vector.load %arg3[%c0_12, %c0_13] : memref<4x32xf32, #tpu.memory_space<vmem>>, vector<4x32xf32>
      %c0_14 = arith.constant 0 : index
      %c0_15 = arith.constant 0 : index
      %29 = vector.load %arg4[%c0_14, %c0_15] : memref<4x32xf32, #tpu.memory_space<vmem>>, vector<4x32xf32>
      %cst_16 = arith.constant dense<0.000000e+00> : vector<4x4xf32>
      %30 = tpu.matmul %28, %29, %cst_16 {dimension_numbers = #tpu.dot_dimension_numbers<[1], [1], [0], [0], [0, 0, 1, 0], [], []>} : vector<4x32xf32>, vector<4x32xf32>, vector<4x4xf32> -> vector<4x4xf32>
      %cst_17 = arith.constant 9.99999997E-7 : f32
      %31 = vector.broadcast %cst_17 : f32 to vector<4x4xf32>
      %32 = arith.maximumf %30, %31 : vector<4x4xf32>
      %cst_18 = arith.constant 1.000000e+01 : f32
      %33 = vector.broadcast %cst_18 : f32 to vector<4x4xf32>
      %34 = arith.mulf %32, %33 : vector<4x4xf32>
      %cst_19 = arith.constant -5.000000e+00 : f32
      %35 = vector.broadcast %cst_19 : f32 to vector<4x4xf32>
      %36 = arith.addf %34, %35 : vector<4x4xf32>
      %37 = arith.mulf %28, %29 : vector<4x32xf32>
      %cst_20 = arith.constant dense<0.000000e+00> : vector<4xf32>
      %38 = vector.multi_reduction <add>, %37, %cst_20 [1] : vector<4x32xf32> to vector<4xf32>
      %39 = vector.shape_cast %38 : vector<4xf32> to vector<4x1xf32>
      %cst_21 = arith.constant 9.99999997E-7 : f32
      %40 = vector.broadcast %cst_21 : f32 to vector<4x1xf32>
      %41 = arith.maximumf %39, %40 : vector<4x1xf32>
      %cst_22 = arith.constant 1.000000e+01 : f32
      %42 = vector.broadcast %cst_22 : f32 to vector<4x1xf32>
      %43 = arith.mulf %41, %42 : vector<4x1xf32>
      %cst_23 = arith.constant -5.000000e+00 : f32
      %44 = vector.broadcast %cst_23 : f32 to vector<4x1xf32>
      %45 = arith.addf %43, %44 : vector<4x1xf32>
      %cst_24 = arith.constant dense<0xFF800000> : vector<4xf32>
      %46 = vector.multi_reduction <maximumf>, %36, %cst_24 [1] : vector<4x4xf32> to vector<4xf32>
      %47 = vector.shape_cast %46 : vector<4xf32> to vector<4x1xf32>
      %48 = vector.broadcast %47 : vector<4x1xf32> to vector<4x4xf32>
      %49 = arith.subf %36, %48 : vector<4x4xf32>
      %50 = math.exp %49 : vector<4x4xf32>
      %cst_25 = arith.constant dense<0.000000e+00> : vector<4xf32>
      %51 = vector.multi_reduction <add>, %50, %cst_25 [1] : vector<4x4xf32> to vector<4xf32>
      %52 = vector.shape_cast %51 : vector<4xf32> to vector<4x1xf32>
      %53 = math.log %52 : vector<4x1xf32>
      %54 = arith.addf %47, %53 : vector<4x1xf32>
      %55 = arith.subf %54, %45 : vector<4x1xf32>
      %cst_26 = arith.constant dense<0.000000e+00> : vector<1xf32>
      %56 = vector.multi_reduction <add>, %55, %cst_26 [0] : vector<4x1xf32> to vector<1xf32>
      %57 = vector.shape_cast %56 : vector<1xf32> to vector<1x1xf32>
      %cst_27 = arith.constant 2.500000e-01 : f32
      %58 = vector.broadcast %cst_27 : f32 to vector<1x1xf32>
      %59 = arith.mulf %57, %58 : vector<1x1xf32>
      %c0_28 = arith.constant 0 : index
      %c0_29 = arith.constant 0 : index
      %60 = vector.load %arg2[%c0_28, %c0_29] : memref<1x1xf32, #tpu.memory_space<vmem>>, vector<1x1xf32>
      tpu.vector_store %arg2[%c0_28, %c0_29], %59 {strides = array<i32>} : memref<1x1xf32, #tpu.memory_space<vmem>>, vector<1x1xf32>,
    } else {
    }
    return
  }
  func.func @transform_0(%arg0: i32) -> (i32, i32) {
    %c0_i32 = arith.constant 0 : i32
    %c0_i32_0 = arith.constant 0 : i32
    return %arg0, %c0_i32 : i32, i32
  }
  func.func @transform_1(%arg0: i32) -> (i32, i32) {
    %c0_i32 = arith.constant 0 : i32
    %c0_i32_0 = arith.constant 0 : i32
    %c0_i32_1 = arith.constant 0 : i32
    return %c0_i32, %c0_i32_0 : i32, i32
  }
}

</mosaic_0001>

<bundles_post_ra>
// kernel: tpu_custom_call.1
= control target key start
LH: loop header
LB: loop body
LE: loop exit
PB: predicated region body
PF: predicated region fallthrough
CT: control target
= control target key end

     0   :  { %6 = vsyncpa [#allocation5], 0  ;;  %s275_s0 = inlined_call_operand.hbm [shape: f32[12,32], index: 0, kind: input, shape index: {}]   ;;  %s276_s1 = inlined_call_operand.hbm [shape: f32[1,1], index: 1, kind: output, shape index: {}]  }
   0x1   :  { %7 = vsyncpa [#allocation6], 0  ;;  %s248_s6 = smov [#allocation4]  }
   0x2   :  { %s13_s7 = sshll.u32 %s248_s6, 4  ;;  %s14_s7 = int_to_ptr.vmem [resolvable:$true] %s13_s7 }
   0x3   :  { %s212_s8 = scalar_lea.vmem %s14_s7, 256  ;;  %p217_p1 = scmp.lt.s32.totalorder %s14_s7, %s14_s7 }
   0x4   :  { %p213_p0 = scmp.ne.s32.totalorder %s14_s7, %s212_s8  ;;  %p218_p2 = scmp.lt.s32.totalorder %s212_s8, %s212_s8 }
   0x6   :  { %p219_p3 = por %p218_p2, %p217_p1 }
   0x8   :  { %p220_p4 = pnand %p219_p3, %p213_p0 }
   0xa   :  { %223 = shalt.err (!%p220_p4)
}
   0xb   :  { %s249_s9 = smov 128   ;;  %s250_s10 = smov 8  }
   0xc   :  { %19 = dma.hbm_to_vmem [thread:$0]  %s275_s0, 256, %s14_s7, [#allocation5], %s249_s9, %s249_s9, %s250_s10  }
   0xd   :  { %244 = dma.done.wait [#allocation5], 256  }
   0xe   :  { %245 = vsyncadd [#allocation5], 4294967040  ;;  %v24_v0 = vld [vmem:[#allocation4 + $0x2] ss:$3 sm:$0xf]  ;;  %vm32_vm0 = vcmask 257024  }
   0xf   :  { %v25_v1 = vld [vmem:[#allocation4] ss:$3 sm:$0xf]  ;;  %v28_v3 = vld [vmem:[#allocation4 + $0x1] ss:$3 sm:$0xf]  ;;  %v31_v7 = vmul.f32 %v24_v0, %v24_v0 }
  0x10   :  { %v26_v2 = vadd.f32 %v25_v1, %v24_v0  ;;  %v251_v10 = vmov 0.0   ;;  %vm252_vm1 = vmmov 0   ;;  %vm54_vm2 = vcmask 261120   ;;  %s253_s0 = smov [#allocation7]  }
  0x11   :  { %v33_v9 = vsel %vm32_vm0, %v31_v7, 0.0  ;;  %185 = vmatprep.subr.mxu0 %v251_v10  ;;  %187 = vmatprep.mubr.msk.f32.mxu0 %vm252_vm1, %v251_v10  ;;  %vm141_vm3 = vcmask 27648   ;;  %vm155_vm4 = vcmask 1043456   ;;  %s172_s13 = sshll.u32 %s253_s0, 4  ;;  %vm164_vm5 = vcmask 0   ;;  %s173_s13 = int_to_ptr.vmem [resolvable:$true] %s172_s13 }
  0x12   :  { %v29_v4 = vadd.f32 %v28_v3, %v26_v2  ;;  %s224_s14 = scalar_lea.vmem %s173_s13, 16  ;;  %s228_s15 = scalar_lea.vmem %s173_s13, 32 }
  0x13   :  { %p225_p5 = scmp.ne.s32.totalorder %s173_s13, %s224_s14  ;;  %p229_p6 = scmp.lt.s32.totalorder %s173_s13, %s173_s13 }
  0x14   :  { %v30_v5 = vmul.f32 0.33333334, %v29_v4  ;;  %p230_p7 = scmp.lt.s32.totalorder %s228_s15, %s224_s14 }
  0x16   :  { %v39_v6 = vmul.f32 %v30_v5, %v30_v5  ;;  %p231_p8 = por %p230_p7, %p229_p6 }
  0x18   :  { %v40_v8 = vsel %vm32_vm0, %v39_v6, 0.0  ;;  %p232_p9 = pnand %p231_p8, %p225_p5 }
  0x19   :  { %41 = vadd.xlane.f32.xlu0 %v40_v8 }
  0x1d   :  { %34 = vadd.xlane.f32.xlu0 %v33_v9 }
  0xa2   :  { %v42_v11 = vpop.xlane.xlu0 %41 }
  0xa3   :  { %v43_v12 = vmax.f32 %v42_v11, 1e-24 }
  0xa5   :  { %196 = vrsqrt.f32 %v43_v12 }
  0xa6   :  { %v35_v13 = vpop.xlane.xlu0 %34 }
  0xa7   :  { %v36_v14 = vmax.f32 %v35_v13, 1e-24 }
  0xa9   :  { %198 = vrsqrt.f32 %v36_v14 }
  0xb2   :  { %v197_v15 = vpop.eup %196 }
  0xb3   :  { %v45_v16 = vmul.f32 %v197_v15, %v30_v5 }
  0xb5   :  { %47 = vst.msk [vmem:[#allocation3] sm:$0xf] %vm32_vm0, %v45_v16 }
  0xb6   :  { %v199_v17 = vpop.eup %198 }
  0xb7   :  { %v38_v18 = vmul.f32 %v199_v17, %v24_v0 }
  0xb9   :  { %46 = vst.msk [vmem:[#allocation2] sm:$0xf] %vm32_vm0, %v38_v18 }
  0xbc   :  { %v53_v19 = vld [vmem:[#allocation3] sm:$0xf] }
  0xbd   :  { %186 = vmatpush3.xpose.msk.msra.mxu0 %vm54_vm2, %v53_v19 }
  0xc0   :  { %v52_v20 = vld [vmem:[#allocation2] sm:$0xf] }
  0xc1   :  { %188 = vmatmul.mubr.msk.f32.vlgmr.msra.gmra.mxu0 %vm54_vm2, %v52_v20  ;;  %v134_v21 = vmul.f32 %v53_v19, %v52_v20 }
  0xc3   :  { %v135_v22 = vsel %vm32_vm0, %v134_v21, 0.0 }
  0xc4   :  { %136 = vadd.xlane.f32.xlu0 %v135_v22 }
 0x14d   :  { %v137_v35 = vpop.xlane.xlu0 %136 }
 0x14e   :  { %v138_v36 = vmax.f32 %v137_v35, 1e-06 }
 0x150   :  { %v139_v37 = vmul.f32 10.0, %v138_v36 }
 0x152   :  { %v140_v40 = vadd.f32 -5.0, %v139_v37 }
 0x181   :  { %v127_v23 = vpop.f32.mrf.mxu0 }
 0x182   :  { %v131_v24 = vmax.f32 %v127_v23, 1e-06 }
 0x183   :  { %v189_v25 = vpop.f32.mrf.mxu0 }
 0x184   :  { %v132_v26 = vmul.f32 10.0, %v131_v24 }
 0x186   :  { %v133_v27 = vadd.f32 -5.0, %v132_v26 }
 0x188   :  { %v142_v28 = vsel %vm141_vm3, %v133_v27, -inf }
 0x189   :  { %143 = vmax.xlane.f32.xlu1 %v142_v28 }
 0x212   :  { %v144_v29 = vpop.xlane.xlu1 %143 }
 0x213   :  { %v145_v30 = vsub.f32 %v133_v27, %v144_v29 }
 0x215   :  { %v146_v31 = vmul.f32 1.442695, %v145_v30 }
 0x217   :  { %200 = vpow2.f32 %v146_v31 }
 0x224   :  { %v201_v32 = vpop.eup %200 }
 0x225   :  { %v148_v33 = vsel %vm141_vm3, %v201_v32, 0.0 }
 0x226   :  { %149 = vadd.xlane.f32.xlu1 %v148_v33 }
 0x2af   :  { %v150_v34 = vpop.xlane.xlu1 %149 }
 0x2b0   :  { %202 = vlog2.f32 %v150_v34 }
 0x2bd   :  { %v203_v38 = vpop.eup %202 }
 0x2be   :  { %v152_v39 = vmul.f32 0.6931472, %v203_v38 }
 0x2c0   :  { %v153_v41 = vadd.f32 %v152_v39, %v144_v29 }
 0x2c2   :  { %v154_v42 = vsub.f32 %v153_v41, %v140_v40 }
 0x2c4   :  { %v156_v43 = vsel %vm155_vm4, %v154_v42, 0.0 }
 0x2c5   :  { %v157_v44 = vrot.slane %v156_v43, 4 }
 0x2c7   :  { %v158_v45 = vadd.f32 %v157_v44, %v156_v43 }
 0x2c9   :  { %v159_v46 = vrot.slane %v158_v45, 2 }
 0x2cb   :  { %v160_v47 = vadd.f32 %v159_v46, %v158_v45 }
 0x2cd   :  { %v161_v48 = vrot.slane %v160_v47, 1 }
 0x2cf   :  { %v162_v49 = vadd.f32 %v161_v48, %v160_v47 }
 0x2d1   :  { %v163_v50 = vmul.f32 0.25, %v162_v49 }
 0x2d3   :  { %165 = vst.msk [vmem:[#allocation7] sm:$0x1] %vm164_vm5, %v163_v50 }
 0x2d4   :  { %235 = shalt.err (!%p232_p9)
}
 0x2d5   :  { %175 = dma.vmem_to_hbm [thread:$0]  %s173_s13, 16, %s276_s1, [#allocation6]  }
 0x2d6   :  { %246 = dma.done.wait [#allocation6], 16  }
 0x2d7   :  { %247 = vsyncadd [#allocation6], 4294967280 }
 0x2d8   :  { %179 = vsyncpa [#allocation5], 1 }
 0x2d9   :  { %180 = vsyncpa [#allocation6], 1 }

</bundles_post_ra>
